<compile_context>
chip_gen: v7x
topology: tpu7x:2x2x1
jax: 0.10.0
libtpu: 0.0.40
codegen_flags: <defaults>
</compile_context>

<pallas_src>
import functools

import jax
import jax.numpy as jnp
import numpy as np
from jax.experimental import pallas as pl
from jax.experimental.pallas import tpu as pltpu


def _round_up(x, m):
    return ((x + m - 1) // m) * m


def _lstm_kernel(xproj_ref, whh_ref, out_ref, h_out_ref, c_out_ref,
                 h_sc, c_sc, *, chunk, bz, gp, seq_total, unroll):
    """One seq-chunk of the LSTM recurrence.

    xproj_ref: (chunk*bz, 4*gp) precomputed x @ W_ih^T + b for this chunk,
               time-major (timestep t occupies rows [t*bz, (t+1)*bz)).
    whh_ref:   (gp, 4*gp)       per-gate 128-lane-padded W_hh^T (bf16).
    out_ref:   (chunk*bz, gp)   per-timestep hidden states for this chunk.
    h_out_ref/c_out_ref: (bz, gp) final states (written on the last grid step).
    h_sc/c_sc: (bz, gp) f32 VMEM recurrence state, persists across grid steps.
    """
    ci = pl.program_id(0)

    @pl.when(ci == 0)
    def _():
        h_sc[...] = jnp.zeros_like(h_sc)
        c_sc[...] = jnp.zeros_like(c_sc)

    # Only emit the per-step validity guard if seq does not divide evenly.
    needs_mask = (seq_total % chunk) != 0  # static Python bool

    def step(t, carry):
        def body():
            row = pl.multiple_of(t * bz, bz)
            # Small serial-path matmul: bf16 operands, f32 accumulation.
            gates = xproj_ref[pl.ds(row, bz), :] + jnp.dot(
                h_sc[...].astype(whh_ref.dtype), whh_ref[...],
                preferred_element_type=jnp.float32)

            # 128-lane-aligned gate blocks -> whole-vreg slices (no XLU traffic).
            i_g = jax.nn.sigmoid(gates[:, 0 * gp:1 * gp])
            f_g = jax.nn.sigmoid(gates[:, 1 * gp:2 * gp])
            g_g = jnp.tanh(gates[:, 2 * gp:3 * gp])
            o_g = jax.nn.sigmoid(gates[:, 3 * gp:4 * gp])

            c_new = f_g * c_sc[...] + i_g * g_g
            h_new = o_g * jnp.tanh(c_new)

            c_sc[...] = c_new
            h_sc[...] = h_new
            out_ref[pl.ds(row, bz), :] = h_new  # lane-dense, sublane-aligned

        if needs_mask:
            pl.when(ci * chunk + t < seq_total)(body)
        else:
            body()
        return carry

    jax.lax.fori_loop(0, chunk, step, 0, unroll=unroll)

    @pl.when(ci == pl.num_programs(0) - 1)
    def _():
        h_out_ref[...] = h_sc[...]
        c_out_ref[...] = c_sc[...]


@functools.partial(jax.jit, static_argnames=("seq_chunk", "mxu_dtype", "unroll"))
def encoder_forward(g_seq, emb_table, w_ih, w_hh, b_ih, b_hh,
                    *, seq_chunk=8, mxu_dtype=jnp.bfloat16, unroll=4):
    """
    g_seq:     (bz, seq) int32 grapheme indices
    emb_table: (num_g, emb_dim) float32
    w_ih:      (4H, emb_dim)  (PyTorch layout, gate order [i, f, g, o])
    w_hh:      (4H, H)
    b_ih, b_hh:(4H,)
    Returns (out, h, c) with shapes (bz, seq, H), (bz, H), (bz, H).
    """
    bz, seq = g_seq.shape
    H = w_hh.shape[1]

    GP = _round_up(H, 128)            # per-gate padded lane width
    bz_pad = _round_up(bz, 8)         # pad batch to a full sublane tile
    chunk = max(1, min(seq_chunk, seq))
    n_chunks = -(-seq // chunk)
    seq_pad = n_chunks * chunk

    # ---- Fold W_ih + bias into the embedding table (done once, in f32) ----
    bias = b_ih + b_hh
    wih_p = jnp.concatenate(
        [jnp.pad(w_ih[k * H:(k + 1) * H, :].T, ((0, 0), (0, GP - H)))
         for k in range(4)], axis=1)                        # (emb, 4*GP)
    b_p = jnp.concatenate(
        [jnp.pad(bias[k * H:(k + 1) * H], (0, GP - H))
         for k in range(4)]).reshape(1, 4 * GP)             # (1, 4*GP)
    emb_proj = jnp.dot(emb_table, wih_p,
                       preferred_element_type=jnp.float32) + b_p  # (num_g, 4*GP)

    # Embedding lookup (gather) -- glue in plain JAX, directly time-major.
    x_tm = jnp.take(emb_proj, g_seq.T, axis=0)              # (seq, bz, 4*GP)
    x_tm = jnp.pad(x_tm, ((0, seq_pad - seq), (0, bz_pad - bz), (0, 0)))
    xproj_flat = x_tm.reshape(seq_pad * bz_pad, 4 * GP)

    # Per-gate 128-lane-padded recurrent weight, bf16 for the MXU.
    whh_p = jnp.concatenate(
        [jnp.pad(w_hh[k * H:(k + 1) * H, :].T, ((0, GP - H), (0, GP - H)))
         for k in range(4)], axis=1).astype(mxu_dtype)      # (GP, 4*GP)

    out_flat, h_last, c_last = pl.pallas_call(
        functools.partial(_lstm_kernel, chunk=chunk, bz=bz_pad, gp=GP,
                          seq_total=seq, unroll=min(unroll, chunk)),
        out_shape=(
            jax.ShapeDtypeStruct((seq_pad * bz_pad, GP), jnp.float32),
            jax.ShapeDtypeStruct((bz_pad, GP), jnp.float32),
            jax.ShapeDtypeStruct((bz_pad, GP), jnp.float32),
        ),
        grid_spec=pltpu.PrefetchScalarGridSpec(
            num_scalar_prefetch=0,
            grid=(n_chunks,),  # seq-chunked: caps VMEM, pipelines in/out DMA
            in_specs=[
                pl.BlockSpec((chunk * bz_pad, 4 * GP), lambda i: (i, 0)),  # xproj
                pl.BlockSpec((GP, 4 * GP), lambda i: (0, 0)),              # W_hh^T
            ],
            out_specs=[
                pl.BlockSpec((chunk * bz_pad, GP), lambda i: (i, 0)),      # out
                pl.BlockSpec((bz_pad, GP), lambda i: (0, 0)),              # h_final
                pl.BlockSpec((bz_pad, GP), lambda i: (0, 0)),              # c_final
            ],
            scratch_shapes=[
                pltpu.VMEM((bz_pad, GP), jnp.float32),   # h state (persists)
                pltpu.VMEM((bz_pad, GP), jnp.float32),   # c state (persists)
            ],
        ),
        compiler_params=pltpu.CompilerParams(
            dimension_semantics=("arbitrary",),  # serial recurrence over chunks
        ),
    )(xproj_flat, whh_p)

    # Strip seq / batch / lane padding; return batch_first like PyTorch.
    out = out_flat.reshape(seq_pad, bz_pad, GP)[:seq, :bz, :H]   # (seq, bz, H)
    out = jnp.transpose(out, (1, 0, 2))                          # (bz, seq, H)
    h = h_last[:bz, :H]
    c = c_last[:bz, :H]
    return out, h, c


def _reference_forward(g_seq, emb_table, w_ih, w_hh, b_ih, b_hh,
                       mxu_dtype=jnp.float32):
    """Pure-JAX reference (PyTorch nn.LSTM semantics).

    With mxu_dtype=bf16 it mirrors the kernel's recurrent-matmul quantization
    so the kernel implementation can be checked at tight tolerance; with f32 it
    is the exact module semantics.
    """
    e_seq = jnp.take(emb_table, g_seq, axis=0)  # (bz, seq, emb)
    bz = g_seq.shape[0]
    H = w_hh.shape[1]
    w_hh_t = w_hh.T.astype(mxu_dtype)

    def step(carry, x_t):
        h, c = carry
        rec = jnp.dot(h.astype(mxu_dtype), w_hh_t,
                      preferred_element_type=jnp.float32)
        gates = x_t @ w_ih.T + rec + b_ih + b_hh
        i = jax.nn.sigmoid(gates[:, 0 * H:1 * H])
        f = jax.nn.sigmoid(gates[:, 1 * H:2 * H])
        g = jnp.tanh(gates[:, 2 * H:3 * H])
        o = jax.nn.sigmoid(gates[:, 3 * H:4 * H])
        c = f * c + i * g
        h = o * jnp.tanh(c)
        return (h, c), h

    init = (jnp.zeros((bz, H), jnp.float32), jnp.zeros((bz, H), jnp.float32))
    (h, c), out_tm = jax.lax.scan(step, init, jnp.transpose(e_seq, (1, 0, 2)))
    return jnp.transpose(out_tm, (1, 0, 2)), h, c


if __name__ == "__main__":
    # Module hyper-parameters: Encoder(num_g, emb_dim, hidden_dim)
    num_g, emb_dim, hidden_dim = 30, 16, 32
    bz, seq = 2, 8

    key = jax.random.PRNGKey(0)
    k_emb, k_wih, k_whh, k_bih, k_bhh, k_idx = jax.random.split(key, 6)

    scale = 1.0 / np.sqrt(hidden_dim)
    emb_table = jax.random.normal(k_emb, (num_g, emb_dim), jnp.float32) * 0.1
    w_ih = jax.random.uniform(k_wih, (4 * hidden_dim, emb_dim), jnp.float32, -scale, scale)
    w_hh = jax.random.uniform(k_whh, (4 * hidden_dim, hidden_dim), jnp.float32, -scale, scale)
    b_ih = jax.random.uniform(k_bih, (4 * hidden_dim,), jnp.float32, -scale, scale)
    b_hh = jax.random.uniform(k_bhh, (4 * hidden_dim,), jnp.float32, -scale, scale)

    g_seq = jax.random.randint(k_idx, (bz, seq), 0, num_g, jnp.int32)

    # seq_chunk=4 -> 2 grid steps: exercises cross-chunk state carry in scratch.
    out, h, c = encoder_forward(g_seq, emb_table, w_ih, w_hh, b_ih, b_hh,
                                seq_chunk=4, mxu_dtype=jnp.bfloat16)
    jax.block_until_ready((out, h, c))

    assert out.shape == (bz, seq, hidden_dim)
    assert h.shape == (bz, hidden_dim) and c.shape == (bz, hidden_dim)

    # Implementation check: reference with the identical bf16 recurrent matmul.
    out_m, h_m, c_m = _reference_forward(g_seq, emb_table, w_ih, w_hh, b_ih, b_hh,
                                         mxu_dtype=jnp.bfloat16)
    np.testing.assert_allclose(np.asarray(out), np.asarray(out_m), atol=5e-4, rtol=5e-4)
    np.testing.assert_allclose(np.asarray(h), np.asarray(h_m), atol=5e-4, rtol=5e-4)
    np.testing.assert_allclose(np.asarray(c), np.asarray(c_m), atol=5e-4, rtol=5e-4)

    # Semantics check: exact f32 LSTM reference (bf16 MXU quantization slack).
    out_r, h_r, c_r = _reference_forward(g_seq, emb_table, w_ih, w_hh, b_ih, b_hh,
                                         mxu_dtype=jnp.float32)
    np.testing.assert_allclose(np.asarray(out), np.asarray(out_r), atol=1e-2, rtol=1e-2)
    np.testing.assert_allclose(np.asarray(h), np.asarray(h_r), atol=1e-2, rtol=1e-2)
    np.testing.assert_allclose(np.asarray(c), np.asarray(c_r), atol=1e-2, rtol=1e-2)

    # Exercise the masked path (seq not divisible by the chunk size).
    g_seq2 = jax.random.randint(jax.random.PRNGKey(1), (bz, 7), 0, num_g, jnp.int32)
    out2, h2, c2 = encoder_forward(g_seq2, emb_table, w_ih, w_hh, b_ih, b_hh,
                                   seq_chunk=4, mxu_dtype=jnp.bfloat16)
    jax.block_until_ready((out2, h2, c2))
    out2_m, h2_m, c2_m = _reference_forward(g_seq2, emb_table, w_ih, w_hh, b_ih, b_hh,
                                            mxu_dtype=jnp.bfloat16)
    np.testing.assert_allclose(np.asarray(out2), np.asarray(out2_m), atol=5e-4, rtol=5e-4)
    np.testing.assert_allclose(np.asarray(h2), np.asarray(h2_m), atol=5e-4, rtol=5e-4)
    np.testing.assert_allclose(np.asarray(c2), np.asarray(c2_m), atol=5e-4, rtol=5e-4)

    print("KERNEL_OK")
</pallas_src>

<mosaic_0001>
module attributes {stable_mosaic.version = 11 : i64} {
  func.func @_lstm_kernel(%arg0: i32, %arg1: memref<32x512xf32, #tpu.memory_space<vmem>>, %arg2: memref<128x512xbf16, #tpu.memory_space<vmem>>, %arg3: memref<32x128xf32, #tpu.memory_space<vmem>>, %arg4: memref<8x128xf32, #tpu.memory_space<vmem>>, %arg5: memref<8x128xf32, #tpu.memory_space<vmem>>, %arg6: memref<8x128xf32, #tpu.memory_space<vmem>>, %arg7: memref<8x128xf32, #tpu.memory_space<vmem>>) attributes {dimension_semantics = [#tpu.dimension_semantics<arbitrary>], iteration_bounds = array<i64: 2>, scalar_prefetch = 0 : i64, scratch_operands = 2 : i64, tpu.core_type = #tpu.core_type<tc>, window_params = [{transform_indices = @transform_0, window_bounds = array<i64: 32, 512>}, {pipeline_mode = #tpu.pipeline_mode<synchronous>, transform_indices = @transform_1, window_bounds = array<i64: 128, 512>}, {transform_indices = @transform_2, window_bounds = array<i64: 32, 128>}, {pipeline_mode = #tpu.pipeline_mode<synchronous>, transform_indices = @transform_3, window_bounds = array<i64: 8, 128>}, {pipeline_mode = #tpu.pipeline_mode<synchronous>, transform_indices = @transform_4, window_bounds = array<i64: 8, 128>}]} {
    %c0_i32 = arith.constant 0 : i32
    %0 = arith.cmpi eq, %arg0, %c0_i32 : i32
    %1 = arith.extui %0 : i1 to i32
    %c0_i32_0 = arith.constant 0 : i32
    %2 = arith.cmpi ne, %1, %c0_i32_0 : i32
    scf.if %2 {
      %cst_69 = arith.constant 0.000000e+00 : f32
      %162 = vector.broadcast %cst_69 : f32 to vector<8x128xf32>
      %c0_70 = arith.constant 0 : index
      %c0_71 = arith.constant 0 : index
      %163 = vector.load %arg6[%c0_70, %c0_71] : memref<8x128xf32, #tpu.memory_space<vmem>>, vector<8x128xf32>
      tpu.vector_store %arg6[%c0_70, %c0_71], %162 {strides = array<i32>} : memref<8x128xf32, #tpu.memory_space<vmem>>, vector<8x128xf32>,
      %cst_72 = arith.constant 0.000000e+00 : f32
      %164 = vector.broadcast %cst_72 : f32 to vector<8x128xf32>
      %c0_73 = arith.constant 0 : index
      %c0_74 = arith.constant 0 : index
      %165 = vector.load %arg7[%c0_73, %c0_74] : memref<8x128xf32, #tpu.memory_space<vmem>>, vector<8x128xf32>
      tpu.vector_store %arg7[%c0_73, %c0_74], %164 {strides = array<i32>} : memref<8x128xf32, #tpu.memory_space<vmem>>, vector<8x128xf32>,
    } else {
    }
    %c0_i32_1 = arith.constant 0 : i32
    %c8_i32 = arith.constant 8 : i32
    %3 = arith.muli %c0_i32_1, %c8_i32 : i32
    %4 = tpu.assume_multiple %3, 8 : i32
    %5 = arith.index_cast %4 : i32 to index
    %c0 = arith.constant 0 : index
    %6 = vector.load %arg1[%5, %c0] : memref<32x512xf32, #tpu.memory_space<vmem>>, vector<8x512xf32>
    %c0_2 = arith.constant 0 : index
    %c0_3 = arith.constant 0 : index
    %7 = vector.load %arg6[%c0_2, %c0_3] : memref<8x128xf32, #tpu.memory_space<vmem>>, vector<8x128xf32>
    %8 = arith.truncf %7 : vector<8x128xf32> to vector<8x128xbf16>
    %c0_4 = arith.constant 0 : index
    %c0_5 = arith.constant 0 : index
    %9 = vector.load %arg2[%c0_4, %c0_5] : memref<128x512xbf16, #tpu.memory_space<vmem>>, vector<128x512xbf16>
    %cst = arith.constant dense<0.000000e+00> : vector<8x512xf32>
    %10 = tpu.matmul %8, %9, %cst {dimension_numbers = #tpu.dot_dimension_numbers<[1], [0], [0], [1], [0, 0, 1, 1], [], []>} : vector<8x128xbf16>, vector<128x512xbf16>, vector<8x512xf32> -> vector<8x512xf32>
    %11 = arith.addf %6, %10 : vector<8x512xf32>
    %12 = vector.extract_strided_slice %11 {offsets = [0, 0], sizes = [8, 128], strides = [1, 1]} : vector<8x512xf32> to vector<8x128xf32>
    %13 = arith.negf %12 : vector<8x128xf32>
    %14 = math.exp %13 : vector<8x128xf32>
    %cst_6 = arith.constant 1.000000e+00 : f32
    %15 = vector.broadcast %cst_6 : f32 to vector<8x128xf32>
    %16 = arith.addf %15, %14 : vector<8x128xf32>
    %17 = arith.divf %15, %16 : vector<8x128xf32>
    %18 = vector.extract_strided_slice %11 {offsets = [0, 128], sizes = [8, 128], strides = [1, 1]} : vector<8x512xf32> to vector<8x128xf32>
    %19 = arith.negf %18 : vector<8x128xf32>
    %20 = math.exp %19 : vector<8x128xf32>
    %cst_7 = arith.constant 1.000000e+00 : f32
    %21 = vector.broadcast %cst_7 : f32 to vector<8x128xf32>
    %22 = arith.addf %21, %20 : vector<8x128xf32>
    %23 = arith.divf %21, %22 : vector<8x128xf32>
    %24 = vector.extract_strided_slice %11 {offsets = [0, 256], sizes = [8, 128], strides = [1, 1]} : vector<8x512xf32> to vector<8x128xf32>
    %25 = math.tanh %24 : vector<8x128xf32>
    %26 = vector.extract_strided_slice %11 {offsets = [0, 384], sizes = [8, 128], strides = [1, 1]} : vector<8x512xf32> to vector<8x128xf32>
    %27 = arith.negf %26 : vector<8x128xf32>
    %28 = math.exp %27 : vector<8x128xf32>
    %cst_8 = arith.constant 1.000000e+00 : f32
    %29 = vector.broadcast %cst_8 : f32 to vector<8x128xf32>
    %30 = arith.addf %29, %28 : vector<8x128xf32>
    %31 = arith.divf %29, %30 : vector<8x128xf32>
    %c0_9 = arith.constant 0 : index
    %c0_10 = arith.constant 0 : index
    %32 = vector.load %arg7[%c0_9, %c0_10] : memref<8x128xf32, #tpu.memory_space<vmem>>, vector<8x128xf32>
    %33 = arith.mulf %23, %32 : vector<8x128xf32>
    %34 = arith.mulf %17, %25 : vector<8x128xf32>
    %35 = arith.addf %33, %34 : vector<8x128xf32>
    %36 = math.tanh %35 : vector<8x128xf32>
    %37 = arith.mulf %31, %36 : vector<8x128xf32>
    %c0_11 = arith.constant 0 : index
    %c0_12 = arith.constant 0 : index
    %38 = vector.load %arg7[%c0_11, %c0_12] : memref<8x128xf32, #tpu.memory_space<vmem>>, vector<8x128xf32>
    tpu.vector_store %arg7[%c0_11, %c0_12], %35 {strides = array<i32>} : memref<8x128xf32, #tpu.memory_space<vmem>>, vector<8x128xf32>,
    %c0_13 = arith.constant 0 : index
    %c0_14 = arith.constant 0 : index
    %39 = vector.load %arg6[%c0_13, %c0_14] : memref<8x128xf32, #tpu.memory_space<vmem>>, vector<8x128xf32>
    tpu.vector_store %arg6[%c0_13, %c0_14], %37 {strides = array<i32>} : memref<8x128xf32, #tpu.memory_space<vmem>>, vector<8x128xf32>,
    %40 = arith.index_cast %4 : i32 to index
    %c0_15 = arith.constant 0 : index
    %41 = vector.load %arg3[%40, %c0_15] : memref<32x128xf32, #tpu.memory_space<vmem>>, vector<8x128xf32>
    tpu.vector_store %arg3[%40, %c0_15], %37 {strides = array<i32>} : memref<32x128xf32, #tpu.memory_space<vmem>>, vector<8x128xf32>,
    %c1_i32 = arith.constant 1 : i32
    %c8_i32_16 = arith.constant 8 : i32
    %42 = arith.muli %c1_i32, %c8_i32_16 : i32
    %43 = tpu.assume_multiple %42, 8 : i32
    %44 = arith.index_cast %43 : i32 to index
    %c0_17 = arith.constant 0 : index
    %45 = vector.load %arg1[%44, %c0_17] : memref<32x512xf32, #tpu.memory_space<vmem>>, vector<8x512xf32>
    %c0_18 = arith.constant 0 : index
    %c0_19 = arith.constant 0 : index
    %46 = vector.load %arg6[%c0_18, %c0_19] : memref<8x128xf32, #tpu.memory_space<vmem>>, vector<8x128xf32>
    %47 = arith.truncf %46 : vector<8x128xf32> to vector<8x128xbf16>
    %c0_20 = arith.constant 0 : index
    %c0_21 = arith.constant 0 : index
    %48 = vector.load %arg2[%c0_20, %c0_21] : memref<128x512xbf16, #tpu.memory_space<vmem>>, vector<128x512xbf16>
    %cst_22 = arith.constant dense<0.000000e+00> : vector<8x512xf32>
    %49 = tpu.matmul %47, %48, %cst_22 {dimension_numbers = #tpu.dot_dimension_numbers<[1], [0], [0], [1], [0, 0, 1, 1], [], []>} : vector<8x128xbf16>, vector<128x512xbf16>, vector<8x512xf32> -> vector<8x512xf32>
    %50 = arith.addf %45, %49 : vector<8x512xf32>
    %51 = vector.extract_strided_slice %50 {offsets = [0, 0], sizes = [8, 128], strides = [1, 1]} : vector<8x512xf32> to vector<8x128xf32>
    %52 = arith.negf %51 : vector<8x128xf32>
    %53 = math.exp %52 : vector<8x128xf32>
    %cst_23 = arith.constant 1.000000e+00 : f32
    %54 = vector.broadcast %cst_23 : f32 to vector<8x128xf32>
    %55 = arith.addf %54, %53 : vector<8x128xf32>
    %56 = arith.divf %54, %55 : vector<8x128xf32>
    %57 = vector.extract_strided_slice %50 {offsets = [0, 128], sizes = [8, 128], strides = [1, 1]} : vector<8x512xf32> to vector<8x128xf32>
    %58 = arith.negf %57 : vector<8x128xf32>
    %59 = math.exp %58 : vector<8x128xf32>
    %cst_24 = arith.constant 1.000000e+00 : f32
    %60 = vector.broadcast %cst_24 : f32 to vector<8x128xf32>
    %61 = arith.addf %60, %59 : vector<8x128xf32>
    %62 = arith.divf %60, %61 : vector<8x128xf32>
    %63 = vector.extract_strided_slice %50 {offsets = [0, 256], sizes = [8, 128], strides = [1, 1]} : vector<8x512xf32> to vector<8x128xf32>
    %64 = math.tanh %63 : vector<8x128xf32>
    %65 = vector.extract_strided_slice %50 {offsets = [0, 384], sizes = [8, 128], strides = [1, 1]} : vector<8x512xf32> to vector<8x128xf32>
    %66 = arith.negf %65 : vector<8x128xf32>
    %67 = math.exp %66 : vector<8x128xf32>
    %cst_25 = arith.constant 1.000000e+00 : f32
    %68 = vector.broadcast %cst_25 : f32 to vector<8x128xf32>
    %69 = arith.addf %68, %67 : vector<8x128xf32>
    %70 = arith.divf %68, %69 : vector<8x128xf32>
    %c0_26 = arith.constant 0 : index
    %c0_27 = arith.constant 0 : index
    %71 = vector.load %arg7[%c0_26, %c0_27] : memref<8x128xf32, #tpu.memory_space<vmem>>, vector<8x128xf32>
    %72 = arith.mulf %62, %71 : vector<8x128xf32>
    %73 = arith.mulf %56, %64 : vector<8x128xf32>
    %74 = arith.addf %72, %73 : vector<8x128xf32>
    %75 = math.tanh %74 : vector<8x128xf32>
    %76 = arith.mulf %70, %75 : vector<8x128xf32>
    %c0_28 = arith.constant 0 : index
    %c0_29 = arith.constant 0 : index
    %77 = vector.load %arg7[%c0_28, %c0_29] : memref<8x128xf32, #tpu.memory_space<vmem>>, vector<8x128xf32>
    tpu.vector_store %arg7[%c0_28, %c0_29], %74 {strides = array<i32>} : memref<8x128xf32, #tpu.memory_space<vmem>>, vector<8x128xf32>,
    %c0_30 = arith.constant 0 : index
    %c0_31 = arith.constant 0 : index
    %78 = vector.load %arg6[%c0_30, %c0_31] : memref<8x128xf32, #tpu.memory_space<vmem>>, vector<8x128xf32>
    tpu.vector_store %arg6[%c0_30, %c0_31], %76 {strides = array<i32>} : memref<8x128xf32, #tpu.memory_space<vmem>>, vector<8x128xf32>,
    %79 = arith.index_cast %43 : i32 to index
    %c0_32 = arith.constant 0 : index
    %80 = vector.load %arg3[%79, %c0_32] : memref<32x128xf32, #tpu.memory_space<vmem>>, vector<8x128xf32>
    tpu.vector_store %arg3[%79, %c0_32], %76 {strides = array<i32>} : memref<32x128xf32, #tpu.memory_space<vmem>>, vector<8x128xf32>,
    %c2_i32 = arith.constant 2 : i32
    %c8_i32_33 = arith.constant 8 : i32
    %81 = arith.muli %c2_i32, %c8_i32_33 : i32
    %82 = tpu.assume_multiple %81, 8 : i32
    %83 = arith.index_cast %82 : i32 to index
    %c0_34 = arith.constant 0 : index
    %84 = vector.load %arg1[%83, %c0_34] : memref<32x512xf32, #tpu.memory_space<vmem>>, vector<8x512xf32>
    %c0_35 = arith.constant 0 : index
    %c0_36 = arith.constant 0 : index
    %85 = vector.load %arg6[%c0_35, %c0_36] : memref<8x128xf32, #tpu.memory_space<vmem>>, vector<8x128xf32>
    %86 = arith.truncf %85 : vector<8x128xf32> to vector<8x128xbf16>
    %c0_37 = arith.constant 0 : index
    %c0_38 = arith.constant 0 : index
    %87 = vector.load %arg2[%c0_37, %c0_38] : memref<128x512xbf16, #tpu.memory_space<vmem>>, vector<128x512xbf16>
    %cst_39 = arith.constant dense<0.000000e+00> : vector<8x512xf32>
    %88 = tpu.matmul %86, %87, %cst_39 {dimension_numbers = #tpu.dot_dimension_numbers<[1], [0], [0], [1], [0, 0, 1, 1], [], []>} : vector<8x128xbf16>, vector<128x512xbf16>, vector<8x512xf32> -> vector<8x512xf32>
    %89 = arith.addf %84, %88 : vector<8x512xf32>
    %90 = vector.extract_strided_slice %89 {offsets = [0, 0], sizes = [8, 128], strides = [1, 1]} : vector<8x512xf32> to vector<8x128xf32>
    %91 = arith.negf %90 : vector<8x128xf32>
    %92 = math.exp %91 : vector<8x128xf32>
    %cst_40 = arith.constant 1.000000e+00 : f32
    %93 = vector.broadcast %cst_40 : f32 to vector<8x128xf32>
    %94 = arith.addf %93, %92 : vector<8x128xf32>
    %95 = arith.divf %93, %94 : vector<8x128xf32>
    %96 = vector.extract_strided_slice %89 {offsets = [0, 128], sizes = [8, 128], strides = [1, 1]} : vector<8x512xf32> to vector<8x128xf32>
    %97 = arith.negf %96 : vector<8x128xf32>
    %98 = math.exp %97 : vector<8x128xf32>
    %cst_41 = arith.constant 1.000000e+00 : f32
    %99 = vector.broadcast %cst_41 : f32 to vector<8x128xf32>
    %100 = arith.addf %99, %98 : vector<8x128xf32>
    %101 = arith.divf %99, %100 : vector<8x128xf32>
    %102 = vector.extract_strided_slice %89 {offsets = [0, 256], sizes = [8, 128], strides = [1, 1]} : vector<8x512xf32> to vector<8x128xf32>
    %103 = math.tanh %102 : vector<8x128xf32>
    %104 = vector.extract_strided_slice %89 {offsets = [0, 384], sizes = [8, 128], strides = [1, 1]} : vector<8x512xf32> to vector<8x128xf32>
    %105 = arith.negf %104 : vector<8x128xf32>
    %106 = math.exp %105 : vector<8x128xf32>
    %cst_42 = arith.constant 1.000000e+00 : f32
    %107 = vector.broadcast %cst_42 : f32 to vector<8x128xf32>
    %108 = arith.addf %107, %106 : vector<8x128xf32>
    %109 = arith.divf %107, %108 : vector<8x128xf32>
    %c0_43 = arith.constant 0 : index
    %c0_44 = arith.constant 0 : index
    %110 = vector.load %arg7[%c0_43, %c0_44] : memref<8x128xf32, #tpu.memory_space<vmem>>, vector<8x128xf32>
    %111 = arith.mulf %101, %110 : vector<8x128xf32>
    %112 = arith.mulf %95, %103 : vector<8x128xf32>
    %113 = arith.addf %111, %112 : vector<8x128xf32>
    %114 = math.tanh %113 : vector<8x128xf32>
    %115 = arith.mulf %109, %114 : vector<8x128xf32>
    %c0_45 = arith.constant 0 : index
    %c0_46 = arith.constant 0 : index
    %116 = vector.load %arg7[%c0_45, %c0_46] : memref<8x128xf32, #tpu.memory_space<vmem>>, vector<8x128xf32>
    tpu.vector_store %arg7[%c0_45, %c0_46], %113 {strides = array<i32>} : memref<8x128xf32, #tpu.memory_space<vmem>>, vector<8x128xf32>,
    %c0_47 = arith.constant 0 : index
    %c0_48 = arith.constant 0 : index
    %117 = vector.load %arg6[%c0_47, %c0_48] : memref<8x128xf32, #tpu.memory_space<vmem>>, vector<8x128xf32>
    tpu.vector_store %arg6[%c0_47, %c0_48], %115 {strides = array<i32>} : memref<8x128xf32, #tpu.memory_space<vmem>>, vector<8x128xf32>,
    %118 = arith.index_cast %82 : i32 to index
    %c0_49 = arith.constant 0 : index
    %119 = vector.load %arg3[%118, %c0_49] : memref<32x128xf32, #tpu.memory_space<vmem>>, vector<8x128xf32>
    tpu.vector_store %arg3[%118, %c0_49], %115 {strides = array<i32>} : memref<32x128xf32, #tpu.memory_space<vmem>>, vector<8x128xf32>,
    %c3_i32 = arith.constant 3 : i32
    %c8_i32_50 = arith.constant 8 : i32
    %120 = arith.muli %c3_i32, %c8_i32_50 : i32
    %121 = tpu.assume_multiple %120, 8 : i32
    %122 = arith.index_cast %121 : i32 to index
    %c0_51 = arith.constant 0 : index
    %123 = vector.load %arg1[%122, %c0_51] : memref<32x512xf32, #tpu.memory_space<vmem>>, vector<8x512xf32>
    %c0_52 = arith.constant 0 : index
    %c0_53 = arith.constant 0 : index
    %124 = vector.load %arg6[%c0_52, %c0_53] : memref<8x128xf32, #tpu.memory_space<vmem>>, vector<8x128xf32>
    %125 = arith.truncf %124 : vector<8x128xf32> to vector<8x128xbf16>
    %c0_54 = arith.constant 0 : index
    %c0_55 = arith.constant 0 : index
    %126 = vector.load %arg2[%c0_54, %c0_55] : memref<128x512xbf16, #tpu.memory_space<vmem>>, vector<128x512xbf16>
    %cst_56 = arith.constant dense<0.000000e+00> : vector<8x512xf32>
    %127 = tpu.matmul %125, %126, %cst_56 {dimension_numbers = #tpu.dot_dimension_numbers<[1], [0], [0], [1], [0, 0, 1, 1], [], []>} : vector<8x128xbf16>, vector<128x512xbf16>, vector<8x512xf32> -> vector<8x512xf32>
    %128 = arith.addf %123, %127 : vector<8x512xf32>
    %129 = vector.extract_strided_slice %128 {offsets = [0, 0], sizes = [8, 128], strides = [1, 1]} : vector<8x512xf32> to vector<8x128xf32>
    %130 = arith.negf %129 : vector<8x128xf32>
    %131 = math.exp %130 : vector<8x128xf32>
    %cst_57 = arith.constant 1.000000e+00 : f32
    %132 = vector.broadcast %cst_57 : f32 to vector<8x128xf32>
    %133 = arith.addf %132, %131 : vector<8x128xf32>
    %134 = arith.divf %132, %133 : vector<8x128xf32>
    %135 = vector.extract_strided_slice %128 {offsets = [0, 128], sizes = [8, 128], strides = [1, 1]} : vector<8x512xf32> to vector<8x128xf32>
    %136 = arith.negf %135 : vector<8x128xf32>
    %137 = math.exp %136 : vector<8x128xf32>
    %cst_58 = arith.constant 1.000000e+00 : f32
    %138 = vector.broadcast %cst_58 : f32 to vector<8x128xf32>
    %139 = arith.addf %138, %137 : vector<8x128xf32>
    %140 = arith.divf %138, %139 : vector<8x128xf32>
    %141 = vector.extract_strided_slice %128 {offsets = [0, 256], sizes = [8, 128], strides = [1, 1]} : vector<8x512xf32> to vector<8x128xf32>
    %142 = math.tanh %141 : vector<8x128xf32>
    %143 = vector.extract_strided_slice %128 {offsets = [0, 384], sizes = [8, 128], strides = [1, 1]} : vector<8x512xf32> to vector<8x128xf32>
    %144 = arith.negf %143 : vector<8x128xf32>
    %145 = math.exp %144 : vector<8x128xf32>
    %cst_59 = arith.constant 1.000000e+00 : f32
    %146 = vector.broadcast %cst_59 : f32 to vector<8x128xf32>
    %147 = arith.addf %146, %145 : vector<8x128xf32>
    %148 = arith.divf %146, %147 : vector<8x128xf32>
    %c0_60 = arith.constant 0 : index
    %c0_61 = arith.constant 0 : index
    %149 = vector.load %arg7[%c0_60, %c0_61] : memref<8x128xf32, #tpu.memory_space<vmem>>, vector<8x128xf32>
    %150 = arith.mulf %140, %149 : vector<8x128xf32>
    %151 = arith.mulf %134, %142 : vector<8x128xf32>
    %152 = arith.addf %150, %151 : vector<8x128xf32>
    %153 = math.tanh %152 : vector<8x128xf32>
    %154 = arith.mulf %148, %153 : vector<8x128xf32>
    %c0_62 = arith.constant 0 : index
    %c0_63 = arith.constant 0 : index
    %155 = vector.load %arg7[%c0_62, %c0_63] : memref<8x128xf32, #tpu.memory_space<vmem>>, vector<8x128xf32>
    tpu.vector_store %arg7[%c0_62, %c0_63], %152 {strides = array<i32>} : memref<8x128xf32, #tpu.memory_space<vmem>>, vector<8x128xf32>,
    %c0_64 = arith.constant 0 : index
    %c0_65 = arith.constant 0 : index
    %156 = vector.load %arg6[%c0_64, %c0_65] : memref<8x128xf32, #tpu.memory_space<vmem>>, vector<8x128xf32>
    tpu.vector_store %arg6[%c0_64, %c0_65], %154 {strides = array<i32>} : memref<8x128xf32, #tpu.memory_space<vmem>>, vector<8x128xf32>,
    %157 = arith.index_cast %121 : i32 to index
    %c0_66 = arith.constant 0 : index
    %158 = vector.load %arg3[%157, %c0_66] : memref<32x128xf32, #tpu.memory_space<vmem>>, vector<8x128xf32>
    tpu.vector_store %arg3[%157, %c0_66], %154 {strides = array<i32>} : memref<32x128xf32, #tpu.memory_space<vmem>>, vector<8x128xf32>,
    %c4_i32 = arith.constant 4 : i32
    %c1_i32_67 = arith.constant 1 : i32
    %159 = arith.cmpi eq, %arg0, %c1_i32_67 : i32
    %160 = arith.extui %159 : i1 to i32
    %c0_i32_68 = arith.constant 0 : i32
    %161 = arith.cmpi ne, %160, %c0_i32_68 : i32
    scf.if %161 {
      %c0_69 = arith.constant 0 : index
      %c0_70 = arith.constant 0 : index
      %162 = vector.load %arg6[%c0_69, %c0_70] : memref<8x128xf32, #tpu.memory_space<vmem>>, vector<8x128xf32>
      %c0_71 = arith.constant 0 : index
      %c0_72 = arith.constant 0 : index
      %163 = vector.load %arg4[%c0_71, %c0_72] : memref<8x128xf32, #tpu.memory_space<vmem>>, vector<8x128xf32>
      tpu.vector_store %arg4[%c0_71, %c0_72], %162 {strides = array<i32>} : memref<8x128xf32, #tpu.memory_space<vmem>>, vector<8x128xf32>,
      %c0_73 = arith.constant 0 : index
      %c0_74 = arith.constant 0 : index
      %164 = vector.load %arg7[%c0_73, %c0_74] : memref<8x128xf32, #tpu.memory_space<vmem>>, vector<8x128xf32>
      %c0_75 = arith.constant 0 : index
      %c0_76 = arith.constant 0 : index
      %165 = vector.load %arg5[%c0_75, %c0_76] : memref<8x128xf32, #tpu.memory_space<vmem>>, vector<8x128xf32>
      tpu.vector_store %arg5[%c0_75, %c0_76], %164 {strides = array<i32>} : memref<8x128xf32, #tpu.memory_space<vmem>>, vector<8x128xf32>,
    } else {
    }
    return
  }
  func.func @transform_0(%arg0: i32) -> (i32, i32) {
    %c0_i32 = arith.constant 0 : i32
    %c0_i32_0 = arith.constant 0 : i32
    return %arg0, %c0_i32 : i32, i32
  }
  func.func @transform_1(%arg0: i32) -> (i32, i32) {
    %c0_i32 = arith.constant 0 : i32
    %c0_i32_0 = arith.constant 0 : i32
    %c0_i32_1 = arith.constant 0 : i32
    return %c0_i32, %c0_i32_0 : i32, i32
  }
  func.func @transform_2(%arg0: i32) -> (i32, i32) {
    %c0_i32 = arith.constant 0 : i32
    %c0_i32_0 = arith.constant 0 : i32
    return %arg0, %c0_i32 : i32, i32
  }
  func.func @transform_3(%arg0: i32) -> (i32, i32) {
    %c0_i32 = arith.constant 0 : i32
    %c0_i32_0 = arith.constant 0 : i32
    %c0_i32_1 = arith.constant 0 : i32
    return %c0_i32, %c0_i32_0 : i32, i32
  }
  func.func @transform_4(%arg0: i32) -> (i32, i32) {
    %c0_i32 = arith.constant 0 : i32
    %c0_i32_0 = arith.constant 0 : i32
    %c0_i32_1 = arith.constant 0 : i32
    return %c0_i32, %c0_i32_0 : i32, i32
  }
}

</mosaic_0001>

<bundles_post_ra>
// kernel: encoder_forward.1
= control target key start
LH: loop header
LB: loop body
LE: loop exit
PB: predicated region body
PF: predicated region fallthrough
CT: control target
= control target key end

     0   :  { %s1875_s15 = smov 0   ;;  %s2231_s0 = inlined_call_operand.vmem [shape: f32[64,512], index: 0, kind: input, shape index: {}]   ;;  %s2232_s1 = inlined_call_operand.vmem [shape: bf16[128,512], index: 1, kind: input, shape index: {}]   ;;  %s2233_s2 = inlined_call_operand.vmem [shape: f32[64,128], index: 2, kind: output, shape index: {0}]   ;;  %s2234_s3 = inlined_call_operand.vmem [shape: f32[8,128], index: 3, kind: output, shape index: {1}]   ;;  %s2235_s4 = inlined_call_operand.vmem [shape: f32[8,128], index: 4, kind: output, shape index: {2}]  }
   0x1 LB: > { %s1881_s16 = sadd.s32 4294967295, %s1846_s15   ;;  %p1552_p0 = scmp.ge.s32.totalorder %s1846_s15, 1  ;;  %s1846_s15 = sphi %s1875_s15, %s15_s15  }
   0x2   : > { %p159_p1 = scmp.lt.s32.totalorder %s1846_s15, 3 }
   0x4   : > { %p160_p2 = pnand %p1552_p0, %p159_p1 }
   0x5   : > { %s1553_s17 = sshll.u32 (!%p160_p2), %s1881_s16, 2  ;;  %p1558_p4 = scmp.ne.s32.totalorder (!%p160_p2), %s1881_s16, 0 }
   0x6   : > { %163 = sbr.rel (%p160_p2) target bundleno = 1101 (0x44d), region = 28  ;;  %p187_p3 = scmp.lt.s32.totalorder (!%p160_p2), %s1553_s17, 7 }
   0xd   : > { %s2237_s17 = smov (!%p187_p3, %s1553_s17), 7  ;;  %203 = sbr.rel (%p1558_p4) target bundleno = 20 (0x14), region = 32 }
   0xe   : > { %s1717_s18 = sshll.u32 %s2237_s17, 5  ;;  %s1557_s19 = sshll.u32 %s2237_s17, 3  ;;  %v1848_v0 = vmov (!%p1558_p4), 0.0  }
   0xf   : > { %s1889_s22 = scalar_lea.vmem %s2231_s0, %s1717_s18  ;;  %s1894_s25 = scalar_lea.vmem %s2233_s2, %s1557_s19  ;;  %204 = vst [vmem:[#allocation2] sm:$0xff] (!%p1558_p4), %v1848_v0  ;;  %205 = vst [vmem:[#allocation3] sm:$0xff] (!%p1558_p4), %v1848_v0 }
  0x14 PF: > { %v1900_v1 = vld [vmem:[%s2232_s1 + $0x4] ss:$16 sps:$4 sm:$0xff]   ;;  %v1905_v2 = vld [vmem:[%s2232_s1] ss:$16 sps:$4 sm:$0xff]   ;;  %v1849_v3 = vmov 0   ;;  %v210_v37 = vld [vmem:[%s1889_s22 + $0x8] sm:$0xff] }
  0x15   : > { %439 = vmatprep.mubr.bf16.mxu0 %v1849_v3  ;;  %480 = vmatprep.mubr.bf16.mxu1 %v1849_v3  ;;  %v1913_v4 = vld [vmem:[%s2232_s1 + $0x24] ss:$16 sps:$4 sm:$0xff]   ;;  %v1919_v5 = vld [vmem:[%s2232_s1 + $0x20] ss:$16 sps:$4 sm:$0xff]   ;;  %v1930_v7 = vld [vmem:[%s2232_s1 + $0xc] ss:$16 sps:$4 sm:$0xff]  }
  0x16   : > { %407 = vmatprep.subr.bf16.mxu0 %v1900_v1  ;;  %v1925_v6 = vld [vmem:[%s2232_s1 + $0x44] ss:$16 sps:$4 sm:$0xff]   ;;  %v1935_v8 = vld [vmem:[%s2232_s1 + $0x8] ss:$16 sps:$4 sm:$0xff]   ;;  %v1941_v9 = vld [vmem:[%s2232_s1 + $0x40] ss:$16 sps:$4 sm:$0xff]   ;;  %448 = vmatprep.subr.bf16.mxu1 %v1930_v7 }
  0x17   : > { %408 = vmatpush1.bf16.msra.mxu0 %v1905_v2  ;;  %v1948_v10 = vld [vmem:[%s2232_s1 + $0x64] ss:$16 sps:$4 sm:$0xff]   ;;  %449 = vmatpush1.bf16.msra.mxu1 %v1935_v8  ;;  %v1954_v11 = vld [vmem:[%s2232_s1 + $0x2c] ss:$16 sps:$4 sm:$0xff]   ;;  %v1959_v12 = vld [vmem:[%s2232_s1 + $0x28] ss:$16 sps:$4 sm:$0xff]  }
  0x18   : > { %409 = vmatprep.subr.bf16.mxu0 %v1913_v4  ;;  %450 = vmatprep.subr.bf16.mxu1 %v1954_v11  ;;  %v1966_v13 = vld [vmem:[%s2232_s1 + $0x60] ss:$16 sps:$4 sm:$0xff]   ;;  %v1971_v14 = vld [vmem:[%s2232_s1 + $0x84] ss:$16 sps:$4 sm:$0xff]   ;;  %v1976_v15 = vld [vmem:[%s2232_s1 + $0x4c] ss:$16 sps:$4 sm:$0xff]  }
  0x19   : > { %v1983_v16 = vld [vmem:[%s2232_s1 + $0x48] ss:$16 sps:$4 sm:$0xff]   ;;  %v1989_v17 = vld [vmem:[%s2232_s1 + $0x6c] ss:$16 sps:$4 sm:$0xff]   ;;  %v1995_v18 = vld [vmem:[%s2232_s1 + $0x80] ss:$16 sps:$4 sm:$0xff]  }
  0x1a   : > { %v2001_v19 = vld [vmem:[%s2232_s1 + $0xa4] ss:$16 sps:$4 sm:$0xff]   ;;  %v2007_v20 = vld [vmem:[%s2232_s1 + $0x68] ss:$16 sps:$4 sm:$0xff]   ;;  %v2013_v21 = vld [vmem:[%s2232_s1 + $0x8c] ss:$16 sps:$4 sm:$0xff]  }
  0x1b   : > { %410 = vmatpush1.bf16.msra.mxu0 %v1919_v5  ;;  %451 = vmatpush1.bf16.msra.mxu1 %v1959_v12  ;;  %v2018_v22 = vld [vmem:[%s2232_s1 + $0xa0] ss:$16 sps:$4 sm:$0xff]   ;;  %v2024_v23 = vld [vmem:[%s2232_s1 + $0xc4] ss:$16 sps:$4 sm:$0xff]   ;;  %v2031_v24 = vld [vmem:[%s2232_s1 + $0x88] ss:$16 sps:$4 sm:$0xff]  }
  0x1c   : > { %411 = vmatprep.subr.bf16.mxu0 %v1925_v6  ;;  %452 = vmatprep.subr.bf16.mxu1 %v1976_v15  ;;  %v2037_v25 = vld [vmem:[%s2232_s1 + $0xac] ss:$16 sps:$4 sm:$0xff]   ;;  %v2043_v26 = vld [vmem:[%s2232_s1 + $0xc0] ss:$16 sps:$4 sm:$0xff]   ;;  %v2049_v27 = vld [vmem:[%s2232_s1 + $0xe4] ss:$16 sps:$4 sm:$0xff]  }
  0x1d   : > { %v2055_v28 = vld [vmem:[%s2232_s1 + $0xa8] ss:$16 sps:$4 sm:$0xff]   ;;  %v2061_v29 = vld [vmem:[%s2232_s1 + $0xcc] ss:$16 sps:$4 sm:$0xff]   ;;  %v2067_v30 = vld [vmem:[%s2232_s1 + $0xe0] ss:$16 sps:$4 sm:$0xff]  }
  0x1e   : > { %v213_v31 = vld [vmem:[#allocation2] sm:$0xff]  ;;  %v2074_v32 = vld [vmem:[%s2232_s1 + $0xc8] ss:$16 sps:$4 sm:$0xff]   ;;  %v2080_v33 = vld [vmem:[%s2232_s1 + $0xec] ss:$16 sps:$4 sm:$0xff]   ;;  %p1714_p5 = scmp.ne.s32.totalorder %s1881_s16, 1 }
  0x1f   : > { %412 = vmatpush1.bf16.msra.mxu0 %v1941_v9  ;;  %453 = vmatpush1.bf16.msra.mxu1 %v1983_v16  ;;  %v214_v34 = vpack.c.bf16 %v213_v31, %v213_v31  ;;  %v2087_v35 = vld [vmem:[%s2232_s1 + $0xe8] ss:$16 sps:$4 sm:$0xff]   ;;  %v209_v36 = vld [vmem:[%s1889_s22] sm:$0xff]  ;;  %v211_v52 = vld [vmem:[%s1889_s22 + $0x10] sm:$0xff] }
  0x20   : > { %413 = vmatprep.subr.bf16.mxu0 %v1948_v10  ;;  %454 = vmatprep.subr.bf16.mxu1 %v1989_v17  ;;  %v212_v46 = vld [vmem:[%s1889_s22 + $0x18] sm:$0xff]  ;;  %v512_v61 = vld [vmem:[#allocation3] sm:$0xff] }
  0x23   : > { %414 = vmatpush1.bf16.msra.mxu0 %v1966_v13  ;;  %455 = vmatpush1.bf16.msra.mxu1 %v2007_v20 }
  0x24   : > { %415 = vmatprep.subr.bf16.mxu0 %v1971_v14  ;;  %456 = vmatprep.subr.bf16.mxu1 %v2013_v21 }
  0x27   : > { %416 = vmatpush1.bf16.msra.mxu0 %v1995_v18  ;;  %457 = vmatpush1.bf16.msra.mxu1 %v2031_v24 }
  0x28   : > { %417 = vmatprep.subr.bf16.mxu0 %v2001_v19  ;;  %458 = vmatprep.subr.bf16.mxu1 %v2037_v25 }
  0x2b   : > { %418 = vmatpush1.bf16.msra.mxu0 %v2018_v22  ;;  %459 = vmatpush1.bf16.msra.mxu1 %v2055_v28 }
  0x2c   : > { %419 = vmatprep.subr.bf16.mxu0 %v2024_v23  ;;  %460 = vmatprep.subr.bf16.mxu1 %v2061_v29 }
  0x2f   : > { %420 = vmatpush1.bf16.msra.mxu0 %v2043_v26  ;;  %461 = vmatpush1.bf16.msra.mxu1 %v2074_v32 }
  0x30   : > { %421 = vmatprep.subr.bf16.mxu0 %v2049_v27  ;;  %462 = vmatprep.subr.bf16.mxu1 %v2080_v33 }
  0x33   : > { %422 = vmatpush1.bf16.msra.mxu0 %v2067_v30  ;;  %463 = vmatpush1.bf16.msra.mxu1 %v2087_v35 }
  0x34   : > { %722 = vmatprep.subr.bf16.mxu0 %v1900_v1  ;;  %763 = vmatprep.subr.bf16.mxu1 %v1930_v7 }
  0x36   : > { %440 = vmatmul.mubr.bf16.vlgmr.msra.gmra.mrb[0].mxu0 %v214_v34  ;;  %481 = vmatmul.mubr.bf16.vlgmr.msra.gmra.mrb[0].mxu1 %v214_v34 }
  0x37   : > { %723 = vmatpush1.bf16.msra.mxu0 %v1905_v2  ;;  %754 = vmatprep.mubr.bf16.mxu0 %v1849_v3 }
  0x38   : > { %724 = vmatprep.subr.bf16.mxu0 %v1913_v4  ;;  %764 = vmatpush1.bf16.msra.mxu1 %v1935_v8 }
  0x39   : > { %765 = vmatprep.subr.bf16.mxu1 %v1954_v11  ;;  %795 = vmatprep.mubr.bf16.mxu1 %v1849_v3 }
  0x3b   : > { %725 = vmatpush1.bf16.msra.mxu0 %v1919_v5 }
  0x3c   : > { %726 = vmatprep.subr.bf16.mxu0 %v1925_v6  ;;  %766 = vmatpush1.bf16.msra.mxu1 %v1959_v12 }
  0x3d   : > { %767 = vmatprep.subr.bf16.mxu1 %v1976_v15 }
  0x3f   : > { %727 = vmatpush1.bf16.msra.mxu0 %v1941_v9 }
  0x40   : > { %728 = vmatprep.subr.bf16.mxu0 %v1948_v10  ;;  %768 = vmatpush1.bf16.msra.mxu1 %v1983_v16 }
  0x41   : > { %769 = vmatprep.subr.bf16.mxu1 %v1989_v17 }
  0x43   : > { %729 = vmatpush1.bf16.msra.mxu0 %v1966_v13 }
  0x44   : > { %730 = vmatprep.subr.bf16.mxu0 %v1971_v14  ;;  %770 = vmatpush1.bf16.msra.mxu1 %v2007_v20 }
  0x45   : > { %771 = vmatprep.subr.bf16.mxu1 %v2013_v21 }
  0x47   : > { %731 = vmatpush1.bf16.msra.mxu0 %v1995_v18 }
  0x48   : > { %732 = vmatprep.subr.bf16.mxu0 %v2001_v19  ;;  %772 = vmatpush1.bf16.msra.mxu1 %v2031_v24 }
  0x49   : > { %773 = vmatprep.subr.bf16.mxu1 %v2037_v25 }
  0x4b   : > { %733 = vmatpush1.bf16.msra.mxu0 %v2018_v22 }
  0x4c   : > { %734 = vmatprep.subr.bf16.mxu0 %v2024_v23  ;;  %774 = vmatpush1.bf16.msra.mxu1 %v2055_v28 }
  0x4d   : > { %775 = vmatprep.subr.bf16.mxu1 %v2061_v29 }
  0x4f   : > { %735 = vmatpush1.bf16.msra.mxu0 %v2043_v26 }
  0x50   : > { %736 = vmatprep.subr.bf16.mxu0 %v2049_v27  ;;  %776 = vmatpush1.bf16.msra.mxu1 %v2074_v32 }
  0x51   : > { %777 = vmatprep.subr.bf16.mxu1 %v2080_v33 }
  0x53   : > { %737 = vmatpush1.bf16.msra.mxu0 %v2067_v30 }
  0x54   : > { %1038 = vmatprep.subr.bf16.mxu0 %v1900_v1  ;;  %778 = vmatpush1.bf16.msra.mxu1 %v2087_v35 }
  0x55   : > { %1079 = vmatprep.subr.bf16.mxu1 %v1930_v7 }
 0x109   : > { %v441_v38 = vpop.f32.mrb[0].mxu0  ;;  %v482_v47 = vpop.f32.mrb[0].mxu1 }
 0x10a   : > { %v489_v39 = vadd.f32 %v441_v38, %v209_v36  ;;  %v443_v40 = vpop.f32.mrb[1].mxu0  ;;  %v484_v48 = vpop.f32.mrb[1].mxu1  ;;  %v491_v54 = vadd.f32 %v482_v47, %v211_v52 }
 0x10b   : > { %v490_v41 = vadd.f32 %v443_v40, %v210_v37  ;;  %v445_v42 = vpop.f32.mrb[2].mxu0  ;;  %v492_v49 = vadd.f32 %v484_v48, %v212_v46  ;;  %v486_v50 = vpop.f32.mrb[2].mxu1 }
 0x10c   : > { %v1591_v43 = vmul.f32 -1.442695, %v489_v39  ;;  %v446_v44 = vpop.f32.mrb[3].mxu0  ;;  %v487_v51 = vpop.f32.mrb[3].mxu1  ;;  %v1595_v42 = vld [vmem:[%s1889_s22 + $0x28] sm:$0xff] }
 0x10d   : > { %v1592_v45 = vmul.f32 -1.442695, %v490_v41  ;;  %v1593_v53 = vmul.f32 -1.442695, %v492_v49  ;;  %v1594_v41 = vld [vmem:[%s1889_s22 + $0x20] sm:$0xff] }
 0x10e   : > { %1776 = vpow2.f32 %v1591_v43 }
 0x10f   : > { %1778 = vpow2.f32 %v1592_v45 }
 0x110   : > { %1780 = vpow2.f32 %v1593_v53 }
 0x111   : > { %1782 = vtanh.f32 %v491_v54 }
 0x118   : > { %v1777_v55 = vpop.eup %1776 }
 0x119   : > { %v1779_v56 = vpop.eup %1778  ;;  %v496_v57 = vadd.f32 1.0, %v1777_v55  ;;  %v1596_v55 = vld [vmem:[%s1889_s22 + $0x30] sm:$0xff] }
 0x11a   : > { %v502_v58 = vadd.f32 1.0, %v1779_v56  ;;  %v1781_v59 = vpop.eup %1780 }
 0x11b   : > { %1784 = vrcp.f32 %v496_v57  ;;  %v1783_v60 = vpop.eup %1782  ;;  %v509_v63 = vadd.f32 1.0, %v1781_v59 }
 0x11c   : > { %1786 = vrcp.f32 %v502_v58 }
 0x11d   : > { %1788 = vrcp.f32 %v509_v63 }
 0x125   : > { %v1785_v62 = vpop.eup %1784 }
 0x126   : > { %v1787_v0 = vpop.eup %1786  ;;  %v514_v31 = vmul.f32 %v1785_v62, %v1783_v60 }
 0x127   : > { %v513_v34 = vmul.f32 %v1787_v0, %v512_v61  ;;  %v1789_v37 = vpop.eup %1788 }
 0x129   : > { %v2131_v36 = vadd.f32 %v514_v31, %v513_v34 }
 0x12b   : > { %1790 = vtanh.f32 %v2131_v36 }
 0x135   : > { %v1791_v38 = vpop.eup %1790 }
 0x136   : > { %v517_v39 = vmul.f32 %v1791_v38, %v1789_v37 }
 0x138   : > { %520 = vst [vmem:[%s1894_s25] sm:$0xff] %v517_v39  ;;  %v529_v40 = vpack.c.bf16 %v517_v39, %v517_v39 }
 0x13a   : > { %755 = vmatmul.mubr.bf16.vlgmr.msra.gmra.mrb[4].mxu0 %v529_v40  ;;  %796 = vmatmul.mubr.bf16.vlgmr.msra.gmra.mrb[4].mxu1 %v529_v40 }
 0x13b   : > { %1039 = vmatpush1.bf16.msra.mxu0 %v1905_v2  ;;  %1080 = vmatpush1.bf16.msra.mxu1 %v1935_v8 }
 0x13c   : > { %1040 = vmatprep.subr.bf16.mxu0 %v1913_v4  ;;  %1081 = vmatprep.subr.bf16.mxu1 %v1954_v11 }
 0x13d   : > { %1070 = vmatprep.mubr.bf16.mxu0 %v1849_v3  ;;  %1111 = vmatprep.mubr.bf16.mxu1 %v1849_v3 }
 0x13f   : > { %1041 = vmatpush1.bf16.msra.mxu0 %v1919_v5  ;;  %1082 = vmatpush1.bf16.msra.mxu1 %v1959_v12 }
 0x140   : > { %1042 = vmatprep.subr.bf16.mxu0 %v1925_v6  ;;  %1083 = vmatprep.subr.bf16.mxu1 %v1976_v15 }
 0x143   : > { %1043 = vmatpush1.bf16.msra.mxu0 %v1941_v9  ;;  %1084 = vmatpush1.bf16.msra.mxu1 %v1983_v16 }
 0x144   : > { %1044 = vmatprep.subr.bf16.mxu0 %v1948_v10  ;;  %1085 = vmatprep.subr.bf16.mxu1 %v1989_v17 }
 0x147   : > { %1045 = vmatpush1.bf16.msra.mxu0 %v1966_v13  ;;  %1086 = vmatpush1.bf16.msra.mxu1 %v2007_v20 }
 0x148   : > { %1046 = vmatprep.subr.bf16.mxu0 %v1971_v14  ;;  %1087 = vmatprep.subr.bf16.mxu1 %v2013_v21 }
 0x14b   : > { %1047 = vmatpush1.bf16.msra.mxu0 %v1995_v18  ;;  %1088 = vmatpush1.bf16.msra.mxu1 %v2031_v24 }
 0x14c   : > { %1048 = vmatprep.subr.bf16.mxu0 %v2001_v19  ;;  %1089 = vmatprep.subr.bf16.mxu1 %v2037_v25 }
 0x14f   : > { %1049 = vmatpush1.bf16.msra.mxu0 %v2018_v22  ;;  %1090 = vmatpush1.bf16.msra.mxu1 %v2055_v28 }
 0x150   : > { %1050 = vmatprep.subr.bf16.mxu0 %v2024_v23  ;;  %1091 = vmatprep.subr.bf16.mxu1 %v2061_v29 }
 0x153   : > { %1051 = vmatpush1.bf16.msra.mxu0 %v2043_v26  ;;  %1092 = vmatpush1.bf16.msra.mxu1 %v2074_v32 }
 0x154   : > { %1052 = vmatprep.subr.bf16.mxu0 %v2049_v27  ;;  %1093 = vmatprep.subr.bf16.mxu1 %v2080_v33 }
 0x157   : > { %1053 = vmatpush1.bf16.msra.mxu0 %v2067_v30  ;;  %1094 = vmatpush1.bf16.msra.mxu1 %v2087_v35 }
 0x158   : > { %1354 = vmatprep.subr.bf16.mxu0 %v1900_v1  ;;  %1395 = vmatprep.subr.bf16.mxu1 %v1930_v7  ;;  %v1597_v1 = vld [vmem:[%s1889_s22 + $0x38] sm:$0xff] }
 0x20d   : > { %v756_v43 = vpop.f32.mrb[4].mxu0  ;;  %v797_v44 = vpop.f32.mrb[4].mxu1 }
 0x20e   : > { %v804_v45 = vadd.f32 %v1594_v41, %v756_v43  ;;  %v758_v46 = vpop.f32.mrb[5].mxu0  ;;  %v799_v47 = vpop.f32.mrb[5].mxu1  ;;  %v806_v57 = vadd.f32 %v1596_v55, %v797_v44 }
 0x20f   : > { %v805_v48 = vadd.f32 %v1595_v42, %v758_v46  ;;  %v760_v49 = vpop.f32.mrb[6].mxu0  ;;  %v801_v50 = vpop.f32.mrb[6].mxu1  ;;  %v807_v7 = vadd.f32 %v1597_v1, %v799_v47  ;;  %v1674_v47 = vld [vmem:[%s1889_s22 + $0x60] sm:$0xff] }
 0x210   : > { %v1630_v51 = vmul.f32 -1.442695, %v804_v45  ;;  %v761_v52 = vpop.f32.mrb[7].mxu0  ;;  %v802_v53 = vpop.f32.mrb[7].mxu1 }
 0x211   : > { %v1631_v54 = vmul.f32 -1.442695, %v805_v48  ;;  %v1632_v56 = vmul.f32 -1.442695, %v807_v7  ;;  %v1675_v48 = vld [vmem:[%s1889_s22 + $0x68] sm:$0xff] }
 0x212   : > { %1792 = vpow2.f32 %v1630_v51 }
 0x213   : > { %1794 = vpow2.f32 %v1631_v54 }
 0x214   : > { %1796 = vpow2.f32 %v1632_v56 }
 0x215   : > { %1798 = vtanh.f32 %v806_v57 }
 0x21c   : > { %v1793_v58 = vpop.eup %1792 }
 0x21d   : > { %v1795_v59 = vpop.eup %1794  ;;  %v811_v60 = vadd.f32 1.0, %v1793_v58 }
 0x21e   : > { %v817_v61 = vadd.f32 1.0, %v1795_v59  ;;  %v1797_v62 = vpop.eup %1796  ;;  %v1677_v59 = vld [vmem:[%s1889_s22 + $0x78] sm:$0xff] }
 0x21f   : > { %1800 = vrcp.f32 %v811_v60  ;;  %v1799_v63 = vpop.eup %1798  ;;  %v824_v37 = vadd.f32 1.0, %v1797_v62 }
 0x220   : > { %1802 = vrcp.f32 %v817_v61  ;;  %v1676_v61 = vld [vmem:[%s1889_s22 + $0x70] sm:$0xff] }
 0x221   : > { %1804 = vrcp.f32 %v824_v37 }
 0x229   : > { %v1801_v0 = vpop.eup %1800 }
 0x22a   : > { %v1803_v31 = vpop.eup %1802  ;;  %v829_v34 = vmul.f32 %v1801_v0, %v1799_v63 }
 0x22b   : > { %v828_v38 = vmul.f32 %v1803_v31, %v2131_v36  ;;  %v1805_v40 = vpop.eup %1804 }
 0x22d   : > { %v2174_v39 = vadd.f32 %v829_v34, %v828_v38 }
 0x22f   : > { %1806 = vtanh.f32 %v2174_v39 }
 0x239   : > { %v1807_v41 = vpop.eup %1806 }
 0x23a   : > { %v832_v42 = vmul.f32 %v1807_v41, %v1805_v40 }
 0x23c   : > { %1633 = vst [vmem:[%s1894_s25 + $0x8] sm:$0xff] %v832_v42  ;;  %v845_v43 = vpack.c.bf16 %v832_v42, %v832_v42 }
 0x23e   : > { %1071 = vmatmul.mubr.bf16.vlgmr.msra.gmra.mrb[8].mxu0 %v845_v43  ;;  %1112 = vmatmul.mubr.bf16.vlgmr.msra.gmra.mrb[8].mxu1 %v845_v43 }
 0x23f   : > { %1355 = vmatpush1.bf16.msra.mxu0 %v1905_v2  ;;  %1396 = vmatpush1.bf16.msra.mxu1 %v1935_v8  ;;  %v1634_v2 = vld [vmem:[%s1889_s22 + $0x40] sm:$0xff] }
 0x240   : > { %1356 = vmatprep.subr.bf16.mxu0 %v1913_v4  ;;  %1397 = vmatprep.subr.bf16.mxu1 %v1954_v11 }
 0x241   : > { %1386 = vmatprep.mubr.bf16.mxu0 %v1849_v3  ;;  %1427 = vmatprep.mubr.bf16.mxu1 %v1849_v3  ;;  %v1635_v3 = vld [vmem:[%s1889_s22 + $0x48] sm:$0xff] }
 0x243   : > { %1357 = vmatpush1.bf16.msra.mxu0 %v1919_v5  ;;  %1398 = vmatpush1.bf16.msra.mxu1 %v1959_v12 }
 0x244   : > { %1358 = vmatprep.subr.bf16.mxu0 %v1925_v6  ;;  %1399 = vmatprep.subr.bf16.mxu1 %v1976_v15 }
 0x247   : > { %1359 = vmatpush1.bf16.msra.mxu0 %v1941_v9  ;;  %1400 = vmatpush1.bf16.msra.mxu1 %v1983_v16 }
 0x248   : > { %1360 = vmatprep.subr.bf16.mxu0 %v1948_v10  ;;  %1401 = vmatprep.subr.bf16.mxu1 %v1989_v17  ;;  %v1637_v17 = vld [vmem:[%s1889_s22 + $0x58] sm:$0xff] }
 0x24b   : > { %1361 = vmatpush1.bf16.msra.mxu0 %v1966_v13  ;;  %1402 = vmatpush1.bf16.msra.mxu1 %v2007_v20 }
 0x24c   : > { %1362 = vmatprep.subr.bf16.mxu0 %v1971_v14  ;;  %1403 = vmatprep.subr.bf16.mxu1 %v2013_v21 }
 0x24f   : > { %1363 = vmatpush1.bf16.msra.mxu0 %v1995_v18  ;;  %1404 = vmatpush1.bf16.msra.mxu1 %v2031_v24 }
 0x250   : > { %1364 = vmatprep.subr.bf16.mxu0 %v2001_v19  ;;  %1405 = vmatprep.subr.bf16.mxu1 %v2037_v25  ;;  %v1636_v19 = vld [vmem:[%s1889_s22 + $0x50] sm:$0xff] }
 0x253   : > { %1365 = vmatpush1.bf16.msra.mxu0 %v2018_v22  ;;  %1406 = vmatpush1.bf16.msra.mxu1 %v2055_v28 }
 0x254   : > { %1366 = vmatprep.subr.bf16.mxu0 %v2024_v23  ;;  %1407 = vmatprep.subr.bf16.mxu1 %v2061_v29 }
 0x257   : > { %1367 = vmatpush1.bf16.msra.mxu0 %v2043_v26  ;;  %1408 = vmatpush1.bf16.msra.mxu1 %v2074_v32 }
 0x258   : > { %1368 = vmatprep.subr.bf16.mxu0 %v2049_v27  ;;  %1409 = vmatprep.subr.bf16.mxu1 %v2080_v33 }
 0x25b   : > { %1369 = vmatpush1.bf16.msra.mxu0 %v2067_v30  ;;  %1410 = vmatpush1.bf16.msra.mxu1 %v2087_v35 }
 0x311   : > { %v1072_v4 = vpop.f32.mrb[8].mxu0  ;;  %v1113_v5 = vpop.f32.mrb[8].mxu1 }
 0x312   : > { %v1120_v6 = vadd.f32 %v1634_v2, %v1072_v4  ;;  %v1074_v8 = vpop.f32.mrb[9].mxu0  ;;  %v1115_v9 = vpop.f32.mrb[9].mxu1  ;;  %v1122_v21 = vadd.f32 %v1636_v19, %v1113_v5 }
 0x313   : > { %v1121_v10 = vadd.f32 %v1635_v3, %v1074_v8  ;;  %v1076_v11 = vpop.f32.mrb[10].mxu0  ;;  %v1117_v12 = vpop.f32.mrb[10].mxu1  ;;  %v1123_v18 = vadd.f32 %v1637_v17, %v1115_v9 }
 0x314   : > { %v1670_v13 = vmul.f32 -1.442695, %v1120_v6  ;;  %v1077_v14 = vpop.f32.mrb[11].mxu0  ;;  %v1118_v15 = vpop.f32.mrb[11].mxu1 }
 0x315   : > { %v1671_v16 = vmul.f32 -1.442695, %v1121_v10  ;;  %v1672_v20 = vmul.f32 -1.442695, %v1123_v18 }
 0x316   : > { %1808 = vpow2.f32 %v1670_v13 }
 0x317   : > { %1810 = vpow2.f32 %v1671_v16 }
 0x318   : > { %1812 = vpow2.f32 %v1672_v20 }
 0x319   : > { %1814 = vtanh.f32 %v1122_v21 }
 0x320   : > { %v1809_v22 = vpop.eup %1808 }
 0x321   : > { %v1811_v23 = vpop.eup %1810  ;;  %v1127_v24 = vadd.f32 1.0, %v1809_v22 }
 0x322   : > { %v1133_v25 = vadd.f32 1.0, %v1811_v23  ;;  %v1813_v26 = vpop.eup %1812 }
 0x323   : > { %1816 = vrcp.f32 %v1127_v24  ;;  %v1815_v27 = vpop.eup %1814  ;;  %v1140_v32 = vadd.f32 1.0, %v1813_v26 }
 0x324   : > { %1818 = vrcp.f32 %v1133_v25 }
 0x325   : > { %1820 = vrcp.f32 %v1140_v32 }
 0x32d   : > { %v1817_v28 = vpop.eup %1816 }
 0x32e   : > { %v1819_v29 = vpop.eup %1818  ;;  %v1145_v30 = vmul.f32 %v1817_v28, %v1815_v27 }
 0x32f   : > { %v1144_v33 = vmul.f32 %v1819_v29, %v2174_v39  ;;  %v1821_v36 = vpop.eup %1820 }
 0x331   : > { %v1146_v35 = vadd.f32 %v1145_v30, %v1144_v33 }
 0x333   : > { %1822 = vtanh.f32 %v1146_v35 }
 0x33d   : > { %v1823_v44 = vpop.eup %1822 }
 0x33e   : > { %v1148_v45 = vmul.f32 %v1823_v44, %v1821_v36 }
 0x340   : > { %1673 = vst [vmem:[%s1894_s25 + $0x10] sm:$0xff] %v1148_v45  ;;  %v1161_v46 = vpack.c.bf16 %v1148_v45, %v1148_v45 }
 0x342   : > { %1387 = vmatmul.mubr.bf16.vlgmr.msra.gmra.mrb[12].mxu0 %v1161_v46  ;;  %1428 = vmatmul.mubr.bf16.vlgmr.msra.gmra.mrb[12].mxu1 %v1161_v46 }
 0x415   : > { %v1388_v49 = vpop.f32.mrb[12].mxu0  ;;  %v1429_v50 = vpop.f32.mrb[12].mxu1 }
 0x416   : > { %v1436_v51 = vadd.f32 %v1674_v47, %v1388_v49  ;;  %v1390_v52 = vpop.f32.mrb[13].mxu0  ;;  %v1431_v53 = vpop.f32.mrb[13].mxu1  ;;  %v1438_v63 = vadd.f32 %v1676_v61, %v1429_v50 }
 0x417   : > { %v1437_v54 = vadd.f32 %v1675_v48, %v1390_v52  ;;  %v1392_v1 = vpop.f32.mrb[14].mxu0  ;;  %v1433_v7 = vpop.f32.mrb[14].mxu1  ;;  %v1439_v60 = vadd.f32 %v1677_v59, %v1431_v53 }
 0x418   : > { %v1710_v55 = vmul.f32 -1.442695, %v1436_v51  ;;  %v1393_v56 = vpop.f32.mrb[15].mxu0  ;;  %v1434_v57 = vpop.f32.mrb[15].mxu1 }
 0x419   : > { %v1711_v58 = vmul.f32 -1.442695, %v1437_v54  ;;  %v1712_v62 = vmul.f32 -1.442695, %v1439_v60 }
 0x41a   : > { %1824 = vpow2.f32 %v1710_v55 }
 0x41b   : > { %1826 = vpow2.f32 %v1711_v58 }
 0x41c   : > { %1828 = vpow2.f32 %v1712_v62 }
 0x41d   : > { %1830 = vtanh.f32 %v1438_v63 }
 0x424   : > { %v1825_v0 = vpop.eup %1824 }
 0x425   : > { %v1827_v31 = vpop.eup %1826  ;;  %v1443_v34 = vadd.f32 1.0, %v1825_v0 }
 0x426   : > { %v1449_v37 = vadd.f32 1.0, %v1827_v31  ;;  %v1829_v38 = vpop.eup %1828 }
 0x427   : > { %1832 = vrcp.f32 %v1443_v34  ;;  %v1831_v39 = vpop.eup %1830  ;;  %v1456_v43 = vadd.f32 1.0, %v1829_v38 }
 0x428   : > { %1834 = vrcp.f32 %v1449_v37 }
 0x429   : > { %1836 = vrcp.f32 %v1456_v43 }
 0x431   : > { %v1833_v40 = vpop.eup %1832 }
 0x432   : > { %v1835_v41 = vpop.eup %1834  ;;  %v1461_v42 = vmul.f32 %v1833_v40, %v1831_v39 }
 0x433   : > { %v1460_v2 = vmul.f32 %v1835_v41, %v1146_v35  ;;  %v1837_v4 = vpop.eup %1836 }
 0x435   : > { %v1462_v3 = vadd.f32 %v1461_v42, %v1460_v2 }
 0x437   : > { %1838 = vtanh.f32 %v1462_v3  ;;  %1465 = vst [vmem:[#allocation3] sm:$0xff] %v1462_v3 }
 0x43e   : > { %1472 = sbr.rel (%p1714_p5) target bundleno = 1101 (0x44d), region = 36  ;;  %v1475_v9 = vld [vmem:[#allocation3] sm:$0xff] (!%p1714_p5) }
 0x43f   : > { %1476 = vst [vmem:[%s2235_s4] sm:$0xff] (!%p1714_p5), %v1475_v9 }
 0x441   : > { %v1839_v5 = vpop.eup %1838 }
 0x442   : > { %v1464_v6 = vmul.f32 %v1839_v5, %v1837_v4 }
 0x444   : > { %1466 = vst [vmem:[#allocation2] sm:$0xff] %v1464_v6  ;;  %1713 = vst [vmem:[%s1894_s25 + $0x18] sm:$0xff] %v1464_v6 }
 0x44b   : > { %v1473_v8 = vld [vmem:[#allocation2] sm:$0xff] }
 0x44c   : > { %1474 = vst [vmem:[%s2234_s3] sm:$0xff] %v1473_v8 }
 0x44d PF: > { %s15_s15 = sadd.s32 1, %s1846_s15  }
 0x44e   : > { %p12_p6 = scmp.ge.s32.totalorder %s15_s15, 4  }
 0x450   :  { %14 = sbr.rel (!%p12_p6) target bundleno = 1 (0x1), region = 89 }

</bundles_post_ra>
